<compile_context>
chip_gen: v5e
topology: v5e:2x2
jax: 0.10.0
libtpu: 0.0.40
codegen_flags: <defaults>
</compile_context>

<pallas_src>
import functools

import jax
import jax.numpy as jnp
from jax.experimental import pallas as pl
from jax.experimental.pallas import tpu as pltpu

LANE = 128                      # lane-dense channel width carried through the net
VMEM_LIMIT = 48 * 1024 * 1024   # explicit scoped-VMEM budget (fits v7x's 64 MiB)
BN_EPS = 1e-5


# ----------------------------------------------------------------------------
# small helpers
# ----------------------------------------------------------------------------
def _round_up(x, m):
    return (x + m - 1) // m * m


def _pad_axis(x, n, axis):
    pad = n - x.shape[axis]
    if pad <= 0:
        return x
    widths = [(0, 0)] * x.ndim
    widths[axis] = (0, pad)
    return jnp.pad(x, widths)


def _compiler_params(n_parallel_axes):
    # parallel axes -> megacore sharding on v7x (harmless on v5e/v6e)
    return pltpu.CompilerParams(
        dimension_semantics=("parallel",) * n_parallel_axes,
        vmem_limit_bytes=VMEM_LIMIT)


def _fold_bn(bn):
    scale = bn["gamma"] / jnp.sqrt(bn["var"] + BN_EPS)
    shift = bn["beta"] - bn["mean"] * scale
    return scale, shift


# ----------------------------------------------------------------------------
# Pallas kernels
# ----------------------------------------------------------------------------
def _mm_affine_kernel(x_ref, w_ref, scale_ref, shift_ref, o_ref, *, relu):
    """out_tile = maybe_relu((x_tile @ w) * scale + shift); bf16 MXU, f32 epilogue."""
    acc = jnp.dot(x_ref[...], w_ref[...], preferred_element_type=jnp.float32)
    out = acc * scale_ref[...] + shift_ref[...]
    if relu:
        out = jnp.maximum(out, 0.0)
    o_ref[...] = out.astype(o_ref.dtype)


def matmul_affine(x, w, scale, shift, *, relu, out_dtype=jnp.bfloat16, tm=256):
    """(M,K)@(K,N) fused with a per-column affine (+ReLU).

    Tiled over M so Pallas double-buffers row tiles while the weight matrix and
    the scale/shift vectors stay resident in VMEM (index_map ignores the grid).
    """
    M, K = x.shape
    N = w.shape[1]
    Mp = _round_up(M, 8)                       # keep sublane alignment
    x = _pad_axis(x, Mp, 0)
    tm = min(tm, Mp)
    grid = (pl.cdiv(Mp, tm),)
    out = pl.pallas_call(
        functools.partial(_mm_affine_kernel, relu=relu),
        out_shape=jax.ShapeDtypeStruct((Mp, N), out_dtype),
        grid=grid,
        in_specs=[
            pl.BlockSpec((tm, K), lambda i: (i, 0)),
            pl.BlockSpec((K, N), lambda i: (0, 0)),   # resident weight
            pl.BlockSpec((1, N), lambda i: (0, 0)),   # resident scale
            pl.BlockSpec((1, N), lambda i: (0, 0)),   # resident shift
        ],
        out_specs=pl.BlockSpec((tm, N), lambda i: (i, 0)),
        compiler_params=_compiler_params(1),
    )(x.astype(jnp.bfloat16), w.astype(jnp.bfloat16),
      scale.reshape(1, N).astype(jnp.float32),
      shift.reshape(1, N).astype(jnp.float32))
    return out[:M]


def _conv3x3_kernel(*refs, relu, add_skip):
    """Direct 3x3/s1 conv + folded-BN + ReLU (+ optional fused residual add).

    Patch contributions are built tap-by-tap from contiguous shifted slices of
    the padded image held in VMEM (no im2col in HBM); 9 bf16 MXU matmuls
    accumulate into an f32 accumulator.
    """
    if add_skip:
        x_ref, w_ref, scale_ref, shift_ref, skip_ref, o_ref = refs
    else:
        x_ref, w_ref, scale_ref, shift_ref, o_ref = refs
        skip_ref = None
    _, H, W, Co = o_ref.shape          # W is already padded to a multiple of 8
    Ci = x_ref.shape[-1]
    acc = jnp.zeros((H * W, Co), jnp.float32)
    for di in range(3):
        for dj in range(3):
            piece = x_ref[0, di:di + H, dj:dj + W, :].reshape(H * W, Ci)
            acc = acc + jnp.dot(piece, w_ref[di * 3 + dj],
                                preferred_element_type=jnp.float32)
    out = acc * scale_ref[...] + shift_ref[...]
    if relu:
        out = jnp.maximum(out, 0.0)
    out = out.reshape(H, W, Co)
    if add_skip:
        out = out + skip_ref[0].astype(jnp.float32)   # fused reversible-coupling add
    o_ref[0] = out.astype(o_ref.dtype)


def _maxpool_kernel(ee_ref, eo_ref, oe_ref, oo_ref, o_ref):
    """3x3/s2 max-pool from 4 de-interleaved parity planes (contiguous slices only)."""
    _, Ho, Wo, _ = o_ref.shape
    ee = ee_ref[0]
    eo = eo_ref[0]
    oe = oe_ref[0]
    oo = oo_ref[0]
    m = ee[0:Ho, 0:Wo]
    m = jnp.maximum(m, eo[0:Ho, 0:Wo])
    m = jnp.maximum(m, ee[0:Ho, 1:Wo + 1])
    m = jnp.maximum(m, oe[0:Ho, 0:Wo])
    m = jnp.maximum(m, oo[0:Ho, 0:Wo])
    m = jnp.maximum(m, oe[0:Ho, 1:Wo + 1])
    m = jnp.maximum(m, ee[1:Ho + 1, 0:Wo])
    m = jnp.maximum(m, eo[1:Ho + 1, 0:Wo])
    m = jnp.maximum(m, ee[1:Ho + 1, 1:Wo + 1])
    o_ref[0] = m


# ----------------------------------------------------------------------------
# Wrappers (glue in plain JAX, hot path inside the kernels above)
# ----------------------------------------------------------------------------
def conv3x3_bn_relu(x, w, bn, skip=None):
    """3x3/s1 Conv2d(bias=False) + BatchNorm(eval) + ReLU (+ fused residual add).

    x    : (N, H, W, LANE) bf16 channel-padded activation.
    w    : (3, 3, c_in, c_out) f32 logical weights (zero-padded to LANE here).
    skip : optional (N, H, W, LANE) bf16 added after the ReLU.
    """
    N, H, W, _ = x.shape
    W8 = _round_up(W, 8)               # keep the in-kernel flatten layout-free
    if W8 != W:
        x = _pad_axis(x, W8, 2)
        if skip is not None:
            skip = _pad_axis(skip, W8, 2)
    xp = jnp.pad(x, ((0, 0), (1, 1), (1, 1), (0, 0)))

    wp = _pad_axis(_pad_axis(w, LANE, 2), LANE, 3)
    wp = wp.reshape(9, LANE, LANE).astype(jnp.bfloat16)
    scale, shift = _fold_bn(bn)
    scale = _pad_axis(scale, LANE, 0).reshape(1, LANE).astype(jnp.float32)
    shift = _pad_axis(shift, LANE, 0).reshape(1, LANE).astype(jnp.float32)

    add_skip = skip is not None
    in_specs = [
        pl.BlockSpec((1, H + 2, W8 + 2, LANE), lambda n: (n, 0, 0, 0)),
        pl.BlockSpec((9, LANE, LANE), lambda n: (0, 0, 0)),   # resident weights
        pl.BlockSpec((1, LANE), lambda n: (0, 0)),            # resident scale
        pl.BlockSpec((1, LANE), lambda n: (0, 0)),            # resident shift
    ]
    args = [xp, wp, scale, shift]
    if add_skip:
        in_specs.append(pl.BlockSpec((1, H, W8, LANE), lambda n: (n, 0, 0, 0)))
        args.append(skip)

    out = pl.pallas_call(
        functools.partial(_conv3x3_kernel, relu=True, add_skip=add_skip),
        out_shape=jax.ShapeDtypeStruct((N, H, W8, LANE), jnp.bfloat16),
        grid=(N,),
        in_specs=in_specs,
        out_specs=pl.BlockSpec((1, H, W8, LANE), lambda n: (n, 0, 0, 0)),
        compiler_params=_compiler_params(1),
    )(*args)
    if W8 != W:
        out = out[:, :, :W, :]
    return out


def maxpool_3x3_s2(x):
    """MaxPool2d(kernel_size=3, stride=2, padding=1), NHWC, no 9x HBM window stack."""
    N, H, W, C = x.shape
    assert H % 2 == 0 and W % 2 == 0
    Ho, Wo = H // 2, W // 2
    neg = jnp.finfo(x.dtype).min
    xp = jnp.pad(x, ((0, 0), (1, 1), (1, 1), (0, 0)), constant_values=neg)
    ee = xp[:, 0::2, 0::2, :]
    eo = xp[:, 0::2, 1::2, :]
    oe = xp[:, 1::2, 0::2, :]
    oo = xp[:, 1::2, 1::2, :]
    par_spec = pl.BlockSpec((1, Ho + 1, Wo + 1, C), lambda n: (n, 0, 0, 0))
    return pl.pallas_call(
        _maxpool_kernel,
        out_shape=jax.ShapeDtypeStruct((N, Ho, Wo, C), x.dtype),
        grid=(N,),
        in_specs=[par_spec, par_spec, par_spec, par_spec],
        out_specs=pl.BlockSpec((1, Ho, Wo, C), lambda n: (n, 0, 0, 0)),
        compiler_params=_compiler_params(1),
    )(ee, eo, oe, oo)


def _im2col(x, kh, kw, stride, pad):
    # TODO(synk): move 7x7-stem patch extraction into the kernel (manual halo DMA)
    # to remove the 49x HBM read amplification; kept as XLA glue since the stem
    # input only has 3 channels.
    N, H, W, C = x.shape
    xp = jnp.pad(x, ((0, 0), (pad, pad), (pad, pad), (0, 0)))
    Ho = (H + 2 * pad - kh) // stride + 1
    Wo = (W + 2 * pad - kw) // stride + 1
    cols = []
    for i in range(kh):
        for j in range(kw):
            cols.append(xp[:, i:i + stride * Ho:stride, j:j + stride * Wo:stride, :])
    patches = jnp.concatenate(cols, axis=-1)              # (N, Ho, Wo, kh*kw*C)
    return patches.reshape(N * Ho * Wo, kh * kw * C), (N, Ho, Wo)


def stem_conv_bn_relu(x, w, bn):
    """7x7/s2 Conv + BN + ReLU via im2col + the M-tiled fused matmul kernel.
    Output channels are padded to LANE so every downstream tensor is lane-dense."""
    kh, kw, cin, cout = w.shape
    patches, (N, Ho, Wo) = _im2col(x, kh, kw, 2, 3)
    K = kh * kw * cin
    Kp = _round_up(K, 128)
    patches = _pad_axis(patches, Kp, 1)
    w_mat = _pad_axis(_pad_axis(w.reshape(K, cout), Kp, 0), LANE, 1)
    scale, shift = _fold_bn(bn)
    scale = _pad_axis(scale, LANE, 0)
    shift = _pad_axis(shift, LANE, 0)
    out = matmul_affine(patches, w_mat, scale, shift, relu=True)
    return out.reshape(N, Ho, Wo, LANE)


# ----------------------------------------------------------------------------
# RevNet structure
# ----------------------------------------------------------------------------
def basic_block(x, p, skip):
    """F(x) of BasicBlock with the reversible-coupling add fused into conv2's epilogue:
       skip + relu(bn2(conv2(relu(bn1(conv1(x))))))."""
    h = conv3x3_bn_relu(x, p["w1"], p["bn1"])
    return conv3x3_bn_relu(h, p["w2"], p["bn2"], skip=skip)


def channel_change(x, c_log, target):
    # TODO(synk): onn.ChannelChanger source unavailable; using truncate / zero-pad
    # on the logical channel count (storage stays LANE-padded & lane-dense).
    if target < c_log:
        mask = (jnp.arange(LANE) < target).astype(x.dtype)
        x = x * mask
    return x, target


def downsample_half(x):
    # onn.Upsample(scale_factor=0.5), nearest -> 2x strided subsample (XLA glue).
    return x[:, ::2, ::2, :]


def reversible_layers(x1, x2, c_log, layer_plan):
    for kind, pf, pg in layer_plan:
        if kind == "block":
            y1 = basic_block(x2, pf, skip=x1)     # y1 = x1 + F(x2)
            y2 = basic_block(y1, pg, skip=x2)     # y2 = x2 + G(y1)
            x1, x2 = y1, y2
        elif kind == "down":
            x1 = downsample_half(x1)
            x2 = downsample_half(x2)
        elif kind == "chan":
            x1, c_log = channel_change(x1, c_log, pf)
            x2, c_log = channel_change(x2, c_log, pg)
    return x1, x2, c_log


def revnet_forward(x_nchw, params):
    x = jnp.transpose(x_nchw, (0, 2, 3, 1))                       # NCHW -> NHWC
    x = stem_conv_bn_relu(x, params["stem_w"], params["stem_bn"])  # 7x7/2 + BN + ReLU
    x = maxpool_3x3_s2(x)
    c_log = params["stem_w"].shape[3]
    # torch.cat([x, x], dim=1) -> ReversibleLayers splits into the two streams
    x1, x2, c_log = reversible_layers(x, x, c_log, params["layers"])
    # Head (GAP + FC) is microscopic -> left to XLA per perf review.
    feat = jnp.concatenate([x1[..., :c_log], x2[..., :c_log]], axis=-1)
    feat = jnp.mean(feat.astype(jnp.float32), axis=(1, 2))
    return feat @ params["fc_w"] + params["fc_b"]


# ----------------------------------------------------------------------------
# Deterministic parameter construction (synthetic init, no checkpoints)
# ----------------------------------------------------------------------------
def init_conv(key, kh, kw, cin, cout):
    fan_in = kh * kw * cin
    return jax.random.normal(key, (kh, kw, cin, cout), jnp.float32) * (2.0 / fan_in) ** 0.5


def init_bn(key, c):
    k1, k2, k3, k4 = jax.random.split(key, 4)
    return dict(
        gamma=1.0 + 0.1 * jax.random.normal(k1, (c,), jnp.float32),
        beta=0.1 * jax.random.normal(k2, (c,), jnp.float32),
        mean=0.1 * jax.random.normal(k3, (c,), jnp.float32),
        var=0.5 + jax.random.uniform(k4, (c,), jnp.float32),
    )


def init_basic_block(key, c):
    k1, k2, k3, k4 = jax.random.split(key, 4)
    return dict(w1=init_conv(k1, 3, 3, c, c), bn1=init_bn(k2, c),
                w2=init_conv(k3, 3, 3, c, c), bn2=init_bn(k4, c))


def build_revnet_params(key, num_block, block_feature, k, num_classes):
    expansion = 1                      # BasicBlock.expansion
    inplanes = 32
    keys = list(jax.random.split(key, 128))
    ki = iter(keys)
    params = {
        "stem_w": init_conv(next(ki), 7, 7, 3, inplanes),
        "stem_bn": init_bn(next(ki), inplanes),
    }
    layer_plan = []
    for idx, (feature, nb) in enumerate(zip(block_feature, num_block)):
        feature *= expansion
        if idx != 0:
            layer_plan.append(("down", None, None))
        layer_plan.append(("chan", feature // k, feature // k))
        for _ in range(nb):            # parameter_share = 1 -> fresh params per block pair
            layer_plan.append(("block",
                               init_basic_block(next(ki), feature // k),
                               init_basic_block(next(ki), feature // k)))
    params["layers"] = layer_plan
    fc_in = block_feature[-1] * expansion * (3 - k)
    params["fc_w"] = jax.random.normal(next(ki), (fc_in, num_classes), jnp.float32) / fc_in ** 0.5
    params["fc_b"] = 0.01 * jax.random.normal(next(ki), (num_classes,), jnp.float32)
    return params


# ----------------------------------------------------------------------------
if __name__ == "__main__":
    key = jax.random.PRNGKey(0)
    k_params, k_x = jax.random.split(key)

    num_classes = 10
    num_block = (2, 1)
    block_feature = (16, 32)
    k_split = 1

    params = build_revnet_params(k_params, num_block, block_feature, k_split, num_classes)

    # PyTorch-style NCHW input (batch=2, channels=3, 32x32 image)
    x = jax.random.normal(k_x, (2, 3, 32, 32), jnp.float32)

    logits = revnet_forward(x, params)
    jax.block_until_ready(logits)
    assert logits.shape == (2, num_classes), logits.shape
    assert bool(jnp.all(jnp.isfinite(logits)))
    print("KERNEL_OK")
</pallas_src>

<mosaic_0001>
module attributes {stable_mosaic.version = 11 : i64} {
  func.func @_mm_affine_kernel(%arg0: i32, %arg1: memref<256x256xbf16, #tpu.memory_space<vmem>>, %arg2: memref<256x128xbf16, #tpu.memory_space<vmem>>, %arg3: memref<1x128xf32, #tpu.memory_space<vmem>>, %arg4: memref<1x128xf32, #tpu.memory_space<vmem>>, %arg5: memref<256x128xbf16, #tpu.memory_space<vmem>>) attributes {dimension_semantics = [#tpu.dimension_semantics<parallel>], iteration_bounds = array<i64: 2>, scalar_prefetch = 0 : i64, scratch_operands = 0 : i64, tpu.core_type = #tpu.core_type<tc>, window_params = [{transform_indices = @transform_0, window_bounds = array<i64: 256, 256>}, {pipeline_mode = #tpu.pipeline_mode<synchronous>, transform_indices = @transform_1, window_bounds = array<i64: 256, 128>}, {pipeline_mode = #tpu.pipeline_mode<synchronous>, transform_indices = @transform_2, window_bounds = array<i64: 1, 128>}, {pipeline_mode = #tpu.pipeline_mode<synchronous>, transform_indices = @transform_3, window_bounds = array<i64: 1, 128>}, {transform_indices = @transform_4, window_bounds = array<i64: 256, 128>}]} {
    %c0 = arith.constant 0 : index
    %c0_0 = arith.constant 0 : index
    %0 = vector.load %arg1[%c0, %c0_0] : memref<256x256xbf16, #tpu.memory_space<vmem>>, vector<256x256xbf16>
    %c0_1 = arith.constant 0 : index
    %c0_2 = arith.constant 0 : index
    %1 = vector.load %arg2[%c0_1, %c0_2] : memref<256x128xbf16, #tpu.memory_space<vmem>>, vector<256x128xbf16>
    %cst = arith.constant dense<0.000000e+00> : vector<256x128xf32>
    %2 = tpu.matmul %0, %1, %cst {dimension_numbers = #tpu.dot_dimension_numbers<[1], [0], [0], [1], [0, 0, 1, 1], [], []>} : vector<256x256xbf16>, vector<256x128xbf16>, vector<256x128xf32> -> vector<256x128xf32>
    %c0_3 = arith.constant 0 : index
    %c0_4 = arith.constant 0 : index
    %3 = vector.load %arg3[%c0_3, %c0_4] : memref<1x128xf32, #tpu.memory_space<vmem>>, vector<1x128xf32>
    %4 = vector.broadcast %3 : vector<1x128xf32> to vector<256x128xf32>
    %5 = arith.mulf %2, %4 : vector<256x128xf32>
    %c0_5 = arith.constant 0 : index
    %c0_6 = arith.constant 0 : index
    %6 = vector.load %arg4[%c0_5, %c0_6] : memref<1x128xf32, #tpu.memory_space<vmem>>, vector<1x128xf32>
    %7 = vector.broadcast %6 : vector<1x128xf32> to vector<256x128xf32>
    %8 = arith.addf %5, %7 : vector<256x128xf32>
    %cst_7 = arith.constant 0.000000e+00 : f32
    %9 = vector.broadcast %cst_7 : f32 to vector<256x128xf32>
    %10 = arith.maximumf %8, %9 : vector<256x128xf32>
    %11 = arith.truncf %10 : vector<256x128xf32> to vector<256x128xbf16>
    %c0_8 = arith.constant 0 : index
    %c0_9 = arith.constant 0 : index
    %12 = vector.load %arg5[%c0_8, %c0_9] : memref<256x128xbf16, #tpu.memory_space<vmem>>, vector<256x128xbf16>
    tpu.vector_store %arg5[%c0_8, %c0_9], %11 {strides = array<i32>} : memref<256x128xbf16, #tpu.memory_space<vmem>>, vector<256x128xbf16>,
    return
  }
  func.func @transform_0(%arg0: i32) -> (i32, i32) {
    %c0_i32 = arith.constant 0 : i32
    %c0_i32_0 = arith.constant 0 : i32
    return %arg0, %c0_i32 : i32, i32
  }
  func.func @transform_1(%arg0: i32) -> (i32, i32) {
    %c0_i32 = arith.constant 0 : i32
    %c0_i32_0 = arith.constant 0 : i32
    %c0_i32_1 = arith.constant 0 : i32
    return %c0_i32, %c0_i32_0 : i32, i32
  }
  func.func @transform_2(%arg0: i32) -> (i32, i32) {
    %c0_i32 = arith.constant 0 : i32
    %c0_i32_0 = arith.constant 0 : i32
    %c0_i32_1 = arith.constant 0 : i32
    return %c0_i32, %c0_i32_0 : i32, i32
  }
  func.func @transform_3(%arg0: i32) -> (i32, i32) {
    %c0_i32 = arith.constant 0 : i32
    %c0_i32_0 = arith.constant 0 : i32
    %c0_i32_1 = arith.constant 0 : i32
    return %c0_i32, %c0_i32_0 : i32, i32
  }
  func.func @transform_4(%arg0: i32) -> (i32, i32) {
    %c0_i32 = arith.constant 0 : i32
    %c0_i32_0 = arith.constant 0 : i32
    return %arg0, %c0_i32 : i32, i32
  }
}

</mosaic_0001>

<bundles_post_ra>
// kernel: tpu_custom_call.1
= control target key start
LH: loop header
LB: loop body
LE: loop exit
PB: predicated region body
PF: predicated region fallthrough
CT: control target
= control target key end

     0   :  { %9 = vsyncpa [#allocation3], 0  ;;  %s1903_s0 = inlined_call_operand.hbm [shape: bf16[512,256], index: 0, kind: input, shape index: {}]   ;;  %s1904_s1 = inlined_call_operand.hbm [shape: bf16[256,128], index: 1, kind: input, shape index: {}]   ;;  %s1905_s2 = inlined_call_operand.vmem [shape: f32[1,128], index: 2, kind: input, shape index: {}]   ;;  %s1906_s3 = inlined_call_operand.vmem [shape: f32[1,128], index: 3, kind: input, shape index: {}]   ;;  %s1907_s4 = inlined_call_operand.hbm [shape: bf16[512,128], index: 4, kind: output, shape index: {}]  }
   0x1   :  { %11 = vsyncpa [#allocation3 + $0x1], 0 }
   0x2   :  { %12 = vsyncpa [#allocation6], 0 }
   0x3   :  { %13 = vsyncpa [#allocation4], 0 }
   0x4   :  { %15 = vsyncpa [#allocation4 + $0x1], 0  ;;  %s1603_s15 = smov 0   ;;  %s1605_s16 = smov 0  }
   0x5   :  { %s1607_s17 = smov 0   ;;  %s1609_s18 = smov 0  }
   0x6 LB: > { %s1624_s19 = sadd.s32 4294967295, %s1569_s18   ;;  %s1003_s20 = sadd.s32 4294967294, %s1569_s18   ;;  %s1569_s18 = sphi %s1609_s18, %s1917_s18   ;;  %s1565_s17 = sphi %s1607_s17, %s1916_s17   ;;  %s1561_s16 = sphi %s1605_s16, %s1915_s16   ;;  %s1557_s15 = sphi %s1603_s15, %s1914_s15  }
   0x7   : > { %p41_p0 = scmp.ne.s32.totalorder %s1561_s16, %s1557_s15  ;;  %p42_p1 = scmp.eq.s32.totalorder %s1624_s19, 0 }
   0x8   : > { %p128_p2 = scmp.eq.s32.totalorder %s1624_s19, 1  ;;  %p134_p3 = scmp.eq.s32.totalorder %s1003_s20, 1 }
   0x9   : > { %p1633_p4 = por %p42_p1, %p41_p0  ;;  %p1004_p5 = scmp.ge.s32.totalorder %s1569_s18, 1 }
   0xa   : > { %p1638_p6 = por %p134_p3, %p41_p0  ;;  %p141_p7 = scmp.lt.s32.totalorder %s1569_s18, 3 }
   0xb   : > { %s152_s25 = sshll.u32 %s1904_s1, 4  ;;  %s1571_s27 = smov [#allocation5]   ;;  %s153_s25 = int_to_ptr.hbm [resolvable:$true] %s152_s25 }
   0xc   : > { %p1646_p8 = pnand %p1004_p5, %p141_p7  ;;  %s154_s28 = sshll.u32 %s1571_s27, 4  ;;  %s155_s28 = int_to_ptr.vmem [resolvable:$true] %s154_s28 }
   0xd   : > { %s1656_s29 = sadd.s32 1, %s1569_s18   ;;  %s1572_s30 = smov 64  }
   0xe   : > { %p1382_p9 = pneg %p1646_p8  ;;  %s1573_s5 = smov 4  }
   0xf   : > { %s25_s6 = ssub.s32 %s1569_s18, %s1656_s29  ;;  %s28_s7 = sadd.s32 1, %s1565_s17 }
  0x10   : > { %p1383_p10 = pnand %p1382_p9, %p42_p1  ;;  %p26_p12 = scmp.eq.s32.totalorder %s25_s6, 0 }
  0x11   : > { %p35_p13 = scmp.ne.s32.totalorder %s1565_s17, %s1561_s16  ;;  %p36_p0 = scmp.eq.s32.totalorder %s1569_s18, 0 }
  0x12   : > { %1385 = dma.hbm_to_vmem [thread:$0]  (!%p1383_p10), %s153_s25, 2048, %s155_s28, [#allocation6], %s1572_s30, %s1572_s30, %s1573_s5  }
  0x13   : > { %p1395_p3 = scmp.lt.s32.totalorder %s1569_s18, 2  ;;  %p37_p5 = por %p36_p0, %p35_p13 }
  0x14   : > { %s1666_s8 = scalar_select %p26_p12, %s1565_s17, %s28_s7  }
  0x15   : > { %p1670_p7 = por %p128_p2, %p35_p13  ;;  %s174_s10 = sand.u32 1, %s1565_s17  }
  0x16   : > { %s1213_s11 = sshll.u32 %s1569_s18, 8  ;;  %s1007_s12 = sshll.u32 %s174_s10, 8 }
  0x17   : > { %s184_s20 = scalar_lea.hbm %s1903_s0, %s1213_s11  ;;  %s178_s24 = scalar_lea.vmem [#allocation2], %s1007_s12 }
  0x18   : > { %s185_s23 = sshll.u32 %s184_s20, 4  ;;  %s187_s25 = sshll.u32 %s178_s24, 4  ;;  %s186_s23 = int_to_ptr.hbm [resolvable:$true] %s185_s23  ;;  %s188_s25 = int_to_ptr.vmem [resolvable:$true] %s187_s25 }
  0x19   : > { %p1681_p9 = pnand %p1395_p3, %p37_p5  ;;  %s175_s28 = scalar_lea.sflag [#allocation3], %s174_s10 }
  0x1a   : > { %s1469_s30 = sshra.s32 %s186_s23, 4  ;;  %s1476_s11 = scalar_lea.hbm %s1903_s0, 512  ;;  %s1470_s30 = int_to_ptr.hbm [resolvable:$true] %s1469_s30 }
  0x1b   : > { %s1471_s5 = scalar_lea.hbm %s1470_s30, 256  ;;  %p1473_p10 = pneg %p1681_p9 }
  0x1c   : > { %p1472_p2 = scmp.ne.s32.totalorder %s1470_s30, %s1471_s5  ;;  %p1477_p0 = scmp.lt.s32.totalorder %s1470_s30, %s1903_s0 }
  0x1d   : > { %p1478_p3 = scmp.lt.s32.totalorder %s1476_s11, %s1471_s5 }
  0x1e   : > { %p1474_p12 = pnand %p1473_p10, %p1472_p2 }
  0x1f   : > { %p1479_p5 = por %p1478_p3, %p1477_p0 }
  0x20   : > { %p1475_p13 = pneg %p1474_p12 }
  0x22   : > { %p1480_p11 = pnand %p1479_p5, %p1475_p13 }
  0x24   : > { %1483 = shalt.err (!%p1480_p11)
}
  0x25   : > { %s1574_s10 = smov 128   ;;  %s1575_s14 = smov 8  }
  0x26   : > { %1389 = dma.hbm_to_vmem [thread:$0]  (!%p1681_p9), %s186_s23, 4096, %s188_s25, %s175_s28, %s1574_s10, %s1574_s10, %s1575_s14  }
  0x27   : > { %199 = sbr.rel (%p1646_p8) target bundleno = 346 (0x15a), region = 36  ;;  %s1698_s20 = sand.u32 (!%p1646_p8), 1, %s1561_s16  }
  0x28   : > { %s1012_s24 = sshll.u32 (!%p1646_p8), %s1698_s20, 8  ;;  %s202_s30 = scalar_lea.sflag (!%p1646_p8), [#allocation3], %s1698_s20 }
  0x29   : > { %s1702_s5 = scalar_lea.vmem (!%p1646_p8), [#allocation2], %s1012_s24 }
  0x2c   : > { %1544 = dma.done.wait (%p1633_p4), %s202_s30, 4096  }
  0x2d   : > { %1546 = vsyncadd (%p1633_p4), %s202_s30, 4294963200 }
  0x2e   : > { %1548 = dma.done.wait (%p42_p1), [#allocation6], 2048  }
  0x2f   : > { %1550 = vsyncadd (%p42_p1), [#allocation6], 4294965248  ;;  %v1253_v0 = vld [vmem:[#allocation5 + $0x38] sm:$0xff]  ;;  %v1252_v2 = vld [vmem:[#allocation5 + $0x30] sm:$0xff]  ;;  %s1014_s27 = sshll.u32 %s1698_s20, 7  ;;  %s1262_s6 = sshll.u32 %s1624_s19, 7 }
  0x30   : > { %v1261_v1 = vld [vmem:[#allocation5 + $0x78] sm:$0xff]  ;;  %558 = vmatpush.bf16.msra.mxu0 %v1253_v0  ;;  %1358 = vmatpush.bf16.msra.mxu2 %v1253_v0  ;;  %v1260_v3 = vld [vmem:[#allocation5 + $0x70] sm:$0xff]  ;;  %v1251_v4 = vld [vmem:[#allocation5 + $0x28] sm:$0xff]  ;;  %s1794_s28 = scalar_lea.vmem [#allocation7], %s1014_s27  ;;  %s916_s12 = scalar_lea.hbm %s1907_s4, %s1262_s6 }
  0x31   : > { %647 = vmatpush.bf16.msra.mxu1 %v1261_v1  ;;  %1366 = vmatpush.bf16.msra.mxu3 %v1261_v1  ;;  %v1259_v5 = vld [vmem:[#allocation5 + $0x68] sm:$0xff]  ;;  %v1250_v6 = vld [vmem:[#allocation5 + $0x20] sm:$0xff]  ;;  %v1249_v8 = vld [vmem:[#allocation5 + $0x18] sm:$0xff]  ;;  %s917_s19 = sshll.u32 %s1794_s28, 4  ;;  %s919_s13 = sshll.u32 %s916_s12, 4  ;;  %s918_s19 = int_to_ptr.vmem [resolvable:$true] %s917_s19  ;;  %s920_s13 = int_to_ptr.hbm [resolvable:$true] %s919_s13 }
  0x32   : > { %v1258_v7 = vld [vmem:[#allocation5 + $0x60] sm:$0xff]  ;;  %v1257_v9 = vld [vmem:[#allocation5 + $0x58] sm:$0xff]  ;;  %v1248_v10 = vld [vmem:[#allocation5 + $0x10] sm:$0xff]  ;;  %s905_s10 = scalar_lea.sflag [#allocation4], %s1698_s20  ;;  %s1513_s14 = sshra.s32 %s920_s13, 4  ;;  %s1514_s14 = int_to_ptr.hbm [resolvable:$true] %s1513_s14 }
  0x33   : > { %v1256_v11 = vld [vmem:[#allocation5 + $0x50] sm:$0xff]  ;;  %v1247_v12 = vld [vmem:[#allocation5 + $0x8] sm:$0xff]  ;;  %v1246_v14 = vld [vmem:[#allocation5] sm:$0xff]  ;;  %s1515_s24 = scalar_lea.hbm %s1514_s14, 128  ;;  %s1519_s21 = scalar_lea.hbm %s1907_s4, 256 }
  0x34   : > { %559 = vmatpush.bf16.msra.mxu0 %v1252_v2  ;;  %1359 = vmatpush.bf16.msra.mxu2 %v1252_v2  ;;  %v1255_v13 = vld [vmem:[#allocation5 + $0x48] sm:$0xff]  ;;  %v1254_v15 = vld [vmem:[#allocation5 + $0x40] sm:$0xff]  ;;  %v1025_v28 = vld [vmem:[%s1702_s5 + $0x10] sm:$0xf]  ;;  %p1516_p1 = scmp.ne.s32.totalorder %s1514_s14, %s1515_s24  ;;  %p1520_p11 = scmp.lt.s32.totalorder %s1514_s14, %s1907_s4 }
  0x35   : > { %648 = vmatpush.bf16.msra.mxu1 %v1260_v3  ;;  %1367 = vmatpush.bf16.msra.mxu3 %v1260_v3  ;;  %v1017_v16 = vld [vmem:[%s1702_s5] sm:$0xf]  ;;  %v1215_v17 = vld [vmem:[%s1702_s5 + $0x4] sm:$0xf0]  ;;  %v1214_v20 = vld [vmem:[%s1702_s5 + $0x4] sm:$0xf]  ;;  %p1521_p9 = scmp.lt.s32.totalorder %s1519_s21, %s1515_s24 }
  0x36   : > { %v1081_v18 = vld [vmem:[%s1702_s5 + $0x80] sm:$0xf]  ;;  %v1231_v19 = vld [vmem:[%s1702_s5 + $0x84] sm:$0xf0]  ;;  %v1019_v21 = vld [vmem:[%s1702_s5 + $0x8] sm:$0xf0]  ;;  %v1018_v24 = vor.u32 %v1215_v17, %v1017_v16  ;;  %p1517_p4 = pnand %p1516_p1, %p1670_p7 }
  0x37   : > { %v1230_v22 = vld [vmem:[%s1702_s5 + $0x84] sm:$0xf]  ;;  %v1083_v23 = vld [vmem:[%s1702_s5 + $0x88] sm:$0xf0]  ;;  %v1082_v25 = vor.u32 %v1231_v19, %v1081_v18  ;;  %v1022_v26 = vor.u32 %v1214_v20, %v1019_v21  ;;  %v1217_v29 = vld [vmem:[%s1702_s5 + $0x14] sm:$0xf0]  ;;  %p1522_p2 = por %p1521_p9, %p1520_p11 }
  0x38   : > { %560 = vmatpush.bf16.msra.mxu0 %v1251_v4  ;;  %1360 = vmatpush.bf16.msra.mxu2 %v1251_v4  ;;  %v1086_v27 = vor.u32 %v1230_v22, %v1083_v23  ;;  %v1089_v30 = vld [vmem:[%s1702_s5 + $0x90] sm:$0xf]  ;;  %v1233_v31 = vld [vmem:[%s1702_s5 + $0x94] sm:$0xf0]  ;;  %v1216_v32 = vld [vmem:[%s1702_s5 + $0x14] sm:$0xf]  ;;  %v1026_v36 = vor.u32 %v1217_v29, %v1025_v28  ;;  %p1518_p8 = pneg %p1517_p4 }
  0x39   : > { %649 = vmatpush.bf16.msra.mxu1 %v1259_v5  ;;  %1368 = vmatpush.bf16.msra.mxu3 %v1259_v5  ;;  %v1027_v33 = vld [vmem:[%s1702_s5 + $0x18] sm:$0xf0]  ;;  %v1232_v34 = vld [vmem:[%s1702_s5 + $0x94] sm:$0xf]  ;;  %v1090_v37 = vor.u32 %v1233_v31, %v1089_v30  ;;  %v1033_v40 = vld [vmem:[%s1702_s5 + $0x20] sm:$0xf] }
  0x3a   : > { %v1091_v35 = vld [vmem:[%s1702_s5 + $0x98] sm:$0xf0]  ;;  %v1030_v38 = vor.u32 %v1216_v32, %v1027_v33  ;;  %v1219_v41 = vld [vmem:[%s1702_s5 + $0x24] sm:$0xf0]  ;;  %v1097_v42 = vld [vmem:[%s1702_s5 + $0xa0] sm:$0xf]  ;;  %p1523_p10 = pnand %p1522_p2, %p1518_p8 }
  0x3b   : > { %v1094_v39 = vor.u32 %v1232_v34, %v1091_v35  ;;  %v1235_v43 = vld [vmem:[%s1702_s5 + $0xa4] sm:$0xf0]  ;;  %v1218_v44 = vld [vmem:[%s1702_s5 + $0x24] sm:$0xf]  ;;  %v1035_v45 = vld [vmem:[%s1702_s5 + $0x28] sm:$0xf0]  ;;  %v1034_v48 = vor.u32 %v1219_v41, %v1033_v40 }
  0x3c   : > { %561 = vmatpush.bf16.msra.mxu0 %v1250_v6  ;;  %1361 = vmatpush.bf16.msra.mxu2 %v1250_v6  ;;  %v1234_v46 = vld [vmem:[%s1702_s5 + $0xa4] sm:$0xf]  ;;  %v1099_v47 = vld [vmem:[%s1702_s5 + $0xa8] sm:$0xf0]  ;;  %v1098_v49 = vor.u32 %v1235_v43, %v1097_v42  ;;  %v1038_v50 = vor.u32 %v1218_v44, %v1035_v45  ;;  %v1041_v52 = vld [vmem:[%s1702_s5 + $0x30] sm:$0xf] }
  0x3d   : > { %650 = vmatpush.bf16.msra.mxu1 %v1258_v7  ;;  %1369 = vmatpush.bf16.msra.mxu3 %v1258_v7  ;;  %v1102_v51 = vor.u32 %v1234_v46, %v1099_v47  ;;  %v1221_v53 = vld [vmem:[%s1702_s5 + $0x34] sm:$0xf0]  ;;  %v1105_v54 = vld [vmem:[%s1702_s5 + $0xb0] sm:$0xf]  ;;  %v1220_v56 = vld [vmem:[%s1702_s5 + $0x34] sm:$0xf] }
  0x3e   : > { %v1237_v55 = vld [vmem:[%s1702_s5 + $0xb4] sm:$0xf0]  ;;  %v1043_v57 = vld [vmem:[%s1702_s5 + $0x38] sm:$0xf0]  ;;  %v1236_v58 = vld [vmem:[%s1702_s5 + $0xb4] sm:$0xf]  ;;  %v1042_v60 = vor.u32 %v1221_v53, %v1041_v52 }
  0x3f   : > { %v1107_v59 = vld [vmem:[%s1702_s5 + $0xb8] sm:$0xf0]  ;;  %v1106_v61 = vor.u32 %v1237_v55, %v1105_v54  ;;  %v1046_v62 = vor.u32 %v1220_v56, %v1043_v57  ;;  %v1049_v0 = vld [vmem:[%s1702_s5 + $0x40] sm:$0xf]  ;;  %v1223_v1 = vld [vmem:[%s1702_s5 + $0x44] sm:$0xf0] }
  0x40   : > { %562 = vmatpush.bf16.msra.mxu0 %v1249_v8  ;;  %1362 = vmatpush.bf16.msra.mxu2 %v1249_v8  ;;  %v1110_v63 = vor.u32 %v1236_v58, %v1107_v59  ;;  %v1113_v2 = vld [vmem:[%s1702_s5 + $0xc0] sm:$0xf]  ;;  %v1239_v3 = vld [vmem:[%s1702_s5 + $0xc4] sm:$0xf0]  ;;  %v1222_v4 = vld [vmem:[%s1702_s5 + $0x44] sm:$0xf]  ;;  %v1050_v8 = vor.u32 %v1223_v1, %v1049_v0 }
  0x41   : > { %651 = vmatpush.bf16.msra.mxu1 %v1257_v9  ;;  %1370 = vmatpush.bf16.msra.mxu3 %v1257_v9  ;;  %v1051_v5 = vld [vmem:[%s1702_s5 + $0x48] sm:$0xf0]  ;;  %v1238_v6 = vld [vmem:[%s1702_s5 + $0xc4] sm:$0xf]  ;;  %v1114_v9 = vor.u32 %v1239_v3, %v1113_v2  ;;  %v1224_v16 = vld [vmem:[%s1702_s5 + $0x54] sm:$0xf] }
  0x42   : > { %v1115_v7 = vld [vmem:[%s1702_s5 + $0xc8] sm:$0xf0]  ;;  %v1059_v17 = vld [vmem:[%s1702_s5 + $0x58] sm:$0xf0]  ;;  %v1240_v18 = vld [vmem:[%s1702_s5 + $0xd4] sm:$0xf] }
  0x43   : > { %v1123_v19 = vld [vmem:[%s1702_s5 + $0xd8] sm:$0xf0]  ;;  %v1062_v22 = vor.u32 %v1224_v16, %v1059_v17  ;;  %v1226_v28 = vld [vmem:[%s1702_s5 + $0x64] sm:$0xf]  ;;  %v1067_v29 = vld [vmem:[%s1702_s5 + $0x68] sm:$0xf0] }
  0x44   : > { %563 = vmatpush.bf16.msra.mxu0 %v1248_v10  ;;  %1363 = vmatpush.bf16.msra.mxu2 %v1248_v10  ;;  %v1054_v10 = vor.u32 %v1222_v4, %v1051_v5  ;;  %v1126_v23 = vor.u32 %v1240_v18, %v1123_v19  ;;  %v1242_v30 = vld [vmem:[%s1702_s5 + $0xe4] sm:$0xf]  ;;  %v1131_v31 = vld [vmem:[%s1702_s5 + $0xe8] sm:$0xf0]  ;;  %v1070_v34 = vor.u32 %v1226_v28, %v1067_v29  ;;  %v1228_v40 = vld [vmem:[%s1702_s5 + $0x74] sm:$0xf] }
  0x45   : > { %652 = vmatpush.bf16.msra.mxu1 %v1256_v11  ;;  %1371 = vmatpush.bf16.msra.mxu3 %v1256_v11  ;;  %v1118_v11 = vor.u32 %v1238_v6, %v1115_v7  ;;  %v1134_v35 = vor.u32 %v1242_v30, %v1131_v31  ;;  %v1075_v41 = vld [vmem:[%s1702_s5 + $0x78] sm:$0xf0]  ;;  %v1244_v42 = vld [vmem:[%s1702_s5 + $0xf4] sm:$0xf]  ;;  %v1785_v55 = vld [vmem:[%s1906_s3] ss:$0 sm:$0xff] }
  0x46   : > { %v1139_v43 = vld [vmem:[%s1702_s5 + $0xf8] sm:$0xf0]  ;;  %v1078_v46 = vor.u32 %v1228_v40, %v1075_v41 }
  0x47   : > { %v1142_v47 = vor.u32 %v1244_v42, %v1139_v43 }
  0x48   : > { %564 = vmatpush.bf16.msra.mxu0 %v1247_v12  ;;  %1364 = vmatpush.bf16.msra.mxu2 %v1247_v12  ;;  %v1057_v12 = vld [vmem:[%s1702_s5 + $0x50] sm:$0xf] }
  0x49   : > { %653 = vmatpush.bf16.msra.mxu1 %v1255_v13  ;;  %1372 = vmatpush.bf16.msra.mxu3 %v1255_v13  ;;  %v1225_v13 = vld [vmem:[%s1702_s5 + $0x54] sm:$0xf0] }
  0x4a   : > { %v1058_v20 = vor.u32 %v1225_v13, %v1057_v12 }
  0x4c   : > { %565 = vmatpush.bf16.msra.mxu0 %v1246_v14  ;;  %1365 = vmatpush.bf16.msra.mxu2 %v1246_v14  ;;  %v1121_v14 = vld [vmem:[%s1702_s5 + $0xd0] sm:$0xf] }
  0x4d   : > { %654 = vmatpush.bf16.msra.mxu1 %v1254_v15  ;;  %1373 = vmatpush.bf16.msra.mxu3 %v1254_v15  ;;  %v1241_v15 = vld [vmem:[%s1702_s5 + $0xd4] sm:$0xf0] }
  0x4e   : > { %v1122_v21 = vor.u32 %v1241_v15, %v1121_v14 }
  0x4f   : > { %566 = vmatmul.bf16.vlgmr.msra.gmra.mxu0 %v1018_v24  ;;  %606 = vmatmul.bf16.vlgmr.msra.gmra.mxu2 %v1082_v25  ;;  %v1065_v24 = vld [vmem:[%s1702_s5 + $0x60] sm:$0xf]  ;;  %v1227_v25 = vld [vmem:[%s1702_s5 + $0x64] sm:$0xf0] }
  0x50   : > { %655 = vmatmul.bf16.vlgmr.msra.gmra.mxu1 %v1022_v26  ;;  %695 = vmatmul.bf16.vlgmr.msra.gmra.mxu3 %v1086_v27  ;;  %v1129_v26 = vld [vmem:[%s1702_s5 + $0xe0] sm:$0xf]  ;;  %v1243_v27 = vld [vmem:[%s1702_s5 + $0xe4] sm:$0xf0]  ;;  %v1066_v32 = vor.u32 %v1227_v25, %v1065_v24 }
  0x51   : > { %v1130_v33 = vor.u32 %v1243_v27, %v1129_v26 }
  0x5f   : > { %571 = vmatmul.bf16.gmra.mxu0 %v1026_v36  ;;  %611 = vmatmul.bf16.gmra.mxu2 %v1090_v37  ;;  %v1073_v36 = vld [vmem:[%s1702_s5 + $0x70] sm:$0xf]  ;;  %v1229_v37 = vld [vmem:[%s1702_s5 + $0x74] sm:$0xf0] }
  0x60   : > { %660 = vmatmul.bf16.gmra.mxu1 %v1030_v38  ;;  %700 = vmatmul.bf16.gmra.mxu3 %v1094_v39  ;;  %v1137_v38 = vld [vmem:[%s1702_s5 + $0xf0] sm:$0xf]  ;;  %v1245_v39 = vld [vmem:[%s1702_s5 + $0xf4] sm:$0xf0]  ;;  %v1074_v44 = vor.u32 %v1229_v37, %v1073_v36 }
  0x61   : > { %v1138_v45 = vor.u32 %v1245_v39, %v1137_v38 }
  0x6f   : > { %576 = vmatmul.bf16.gmra.mxu0 %v1034_v48  ;;  %616 = vmatmul.bf16.gmra.mxu2 %v1098_v49 }
  0x70   : > { %665 = vmatmul.bf16.gmra.mxu1 %v1038_v50  ;;  %705 = vmatmul.bf16.gmra.mxu3 %v1102_v51  ;;  %v1779_v51 = vld [vmem:[%s1905_s2] ss:$0 sm:$0xff] }
  0x7f   : > { %581 = vmatmul.bf16.gmra.mxu0 %v1042_v60  ;;  %621 = vmatmul.bf16.gmra.mxu2 %v1106_v61 }
  0x80   : > { %670 = vmatmul.bf16.gmra.mxu1 %v1046_v62  ;;  %710 = vmatmul.bf16.gmra.mxu3 %v1110_v63 }
  0x8f   : > { %586 = vmatmul.bf16.gmra.mxu0 %v1050_v8  ;;  %626 = vmatmul.bf16.gmra.mxu2 %v1114_v9 }
  0x90   : > { %675 = vmatmul.bf16.gmra.mxu1 %v1054_v10  ;;  %715 = vmatmul.bf16.gmra.mxu3 %v1118_v11 }
  0x9f   : > { %591 = vmatmul.bf16.gmra.mxu0 %v1058_v20  ;;  %631 = vmatmul.bf16.gmra.mxu2 %v1122_v21 }
  0xa0   : > { %680 = vmatmul.bf16.gmra.mxu1 %v1062_v22  ;;  %720 = vmatmul.bf16.gmra.mxu3 %v1126_v23 }
  0xaf   : > { %596 = vmatmul.bf16.gmra.mxu0 %v1066_v32  ;;  %636 = vmatmul.bf16.gmra.mxu2 %v1130_v33 }
  0xb0   : > { %685 = vmatmul.bf16.gmra.mxu1 %v1070_v34  ;;  %725 = vmatmul.bf16.gmra.mxu3 %v1134_v35 }
  0xbf   : > { %601 = vmatmul.bf16.gmra.mxu0 %v1074_v44  ;;  %641 = vmatmul.bf16.gmra.mxu2 %v1138_v45 }
  0xc0   : > { %690 = vmatmul.bf16.gmra.mxu1 %v1078_v46  ;;  %730 = vmatmul.bf16.gmra.mxu3 %v1142_v47 }
  0xcc   : > { %v567_v48 = vpop.f32.mrf.mxu0 }
  0xcd   : > { %v656_v49 = vpop.f32.mrf.mxu1 }
  0xce   : > { %v657_v50 = vadd.f32 %v656_v49, %v567_v48 }
  0xd0   : > { %v740_v54 = vmul.f32 %v1779_v51, %v657_v50 }
  0xd2   : > { %v607_v52 = vpop.f32.mrf.mxu2  ;;  %v776_v60 = vadd.f32 %v1785_v55, %v740_v54 }
  0xd3   : > { %v696_v53 = vpop.f32.mrf.mxu3 }
  0xd4   : > { %v569_v56 = vpop.f32.mrf.mxu0  ;;  %v697_v58 = vadd.f32 %v696_v53, %v607_v52  ;;  %v808_v2 = vmax.f32 %v776_v60, 0.0 }
  0xd5   : > { %v658_v57 = vpop.f32.mrf.mxu1 }
  0xd6   : > { %v659_v59 = vadd.f32 %v658_v57, %v569_v56  ;;  %v756_v62 = vmul.f32 %v1779_v51, %v697_v58 }
  0xd8   : > { %v741_v61 = vmul.f32 %v1779_v51, %v659_v59  ;;  %v792_v7 = vadd.f32 %v1785_v55, %v756_v62 }
  0xda   : > { %v777_v63 = vadd.f32 %v1785_v55, %v741_v61  ;;  %v609_v0 = vpop.f32.mrf.mxu2  ;;  %v824_v12 = vmax.f32 %v792_v7, 0.0 }
  0xdb   : > { %v698_v1 = vpop.f32.mrf.mxu3 }
  0xdc   : > { %v809_v3 = vmax.f32 %v777_v63, 0.0  ;;  %v699_v4 = vadd.f32 %v698_v1, %v609_v0  ;;  %v572_v5 = vpop.f32.mrf.mxu0 }
  0xdd   : > { %v661_v6 = vpop.f32.mrf.mxu1 }
  0xde   : > { %v1266_v8 = vpack.c.bf16 %v809_v3, %v808_v2  ;;  %v757_v9 = vmul.f32 %v1779_v51, %v699_v4  ;;  %v662_v11 = vadd.f32 %v661_v6, %v572_v5 }
  0xe0   : > { %1267 = vst [vmem:[%s1794_s28] sm:$0xff] %v1266_v8   ;;  %v793_v10 = vadd.f32 %v1785_v55, %v757_v9  ;;  %v742_v17 = vmul.f32 %v1779_v51, %v662_v11 }
  0xe2   : > { %v825_v13 = vmax.f32 %v793_v10, 0.0  ;;  %v612_v14 = vpop.f32.mrf.mxu2  ;;  %v778_v22 = vadd.f32 %v1785_v55, %v742_v17 }
  0xe3   : > { %v701_v15 = vpop.f32.mrf.mxu3 }
  0xe4   : > { %v1306_v16 = vpack.c.bf16 %v825_v13, %v824_v12  ;;  %v574_v18 = vpop.f32.mrf.mxu0  ;;  %v702_v20 = vadd.f32 %v701_v15, %v612_v14  ;;  %v810_v28 = vmax.f32 %v778_v22, 0.0 }
  0xe5   : > { %v663_v19 = vpop.f32.mrf.mxu1 }
  0xe6   : > { %1350 = vst [vmem:[%s1794_s28 + $0x40] sm:$0xff] %v1306_v16   ;;  %v664_v21 = vadd.f32 %v663_v19, %v574_v18  ;;  %v758_v24 = vmul.f32 %v1779_v51, %v702_v20 }
  0xe8   : > { %v743_v23 = vmul.f32 %v1779_v51, %v664_v21  ;;  %v794_v33 = vadd.f32 %v1785_v55, %v758_v24 }
  0xea   : > { %v779_v25 = vadd.f32 %v1785_v55, %v743_v23  ;;  %v614_v26 = vpop.f32.mrf.mxu2  ;;  %v826_v38 = vmax.f32 %v794_v33, 0.0 }
  0xeb   : > { %v703_v27 = vpop.f32.mrf.mxu3 }
  0xec   : > { %v811_v29 = vmax.f32 %v779_v25, 0.0  ;;  %v704_v30 = vadd.f32 %v703_v27, %v614_v26  ;;  %v577_v31 = vpop.f32.mrf.mxu0 }
  0xed   : > { %v666_v32 = vpop.f32.mrf.mxu1 }
  0xee   : > { %v1271_v34 = vpack.c.bf16 %v811_v29, %v810_v28  ;;  %v759_v35 = vmul.f32 %v1779_v51, %v704_v30  ;;  %v667_v37 = vadd.f32 %v666_v32, %v577_v31 }
  0xf0   : > { %1343 = vst [vmem:[%s1794_s28 + $0x8] sm:$0xff] %v1271_v34   ;;  %v795_v36 = vadd.f32 %v1785_v55, %v759_v35  ;;  %v744_v43 = vmul.f32 %v1779_v51, %v667_v37 }
  0xf2   : > { %v827_v39 = vmax.f32 %v795_v36, 0.0  ;;  %v617_v40 = vpop.f32.mrf.mxu2  ;;  %v780_v48 = vadd.f32 %v1785_v55, %v744_v43 }
  0xf3   : > { %v706_v41 = vpop.f32.mrf.mxu3 }
  0xf4   : > { %v1311_v42 = vpack.c.bf16 %v827_v39, %v826_v38  ;;  %v579_v44 = vpop.f32.mrf.mxu0  ;;  %v707_v46 = vadd.f32 %v706_v41, %v617_v40  ;;  %v812_v56 = vmax.f32 %v780_v48, 0.0 }
  0xf5   : > { %v668_v45 = vpop.f32.mrf.mxu1 }
  0xf6   : > { %1351 = vst [vmem:[%s1794_s28 + $0x48] sm:$0xff] %v1311_v42   ;;  %v669_v47 = vadd.f32 %v668_v45, %v579_v44  ;;  %v760_v50 = vmul.f32 %v1779_v51, %v707_v46 }
  0xf8   : > { %v745_v49 = vmul.f32 %v1779_v51, %v669_v47  ;;  %v796_v61 = vadd.f32 %v1785_v55, %v760_v50 }
  0xfa   : > { %v781_v52 = vadd.f32 %v1785_v55, %v745_v49  ;;  %v619_v53 = vpop.f32.mrf.mxu2  ;;  %v828_v2 = vmax.f32 %v796_v61, 0.0 }
  0xfb   : > { %v708_v54 = vpop.f32.mrf.mxu3 }
  0xfc   : > { %v813_v57 = vmax.f32 %v781_v52, 0.0  ;;  %v709_v58 = vadd.f32 %v708_v54, %v619_v53  ;;  %v582_v59 = vpop.f32.mrf.mxu0 }
  0xfd   : > { %v671_v60 = vpop.f32.mrf.mxu1 }
  0xfe   : > { %v1276_v62 = vpack.c.bf16 %v813_v57, %v812_v56  ;;  %v761_v63 = vmul.f32 %v1779_v51, %v709_v58  ;;  %v672_v1 = vadd.f32 %v671_v60, %v582_v59 }
 0x100   : > { %1344 = vst [vmem:[%s1794_s28 + $0x10] sm:$0xff] %v1276_v62   ;;  %v797_v0 = vadd.f32 %v1785_v55, %v761_v63  ;;  %v746_v7 = vmul.f32 %v1779_v51, %v672_v1 }
 0x102   : > { %v829_v3 = vmax.f32 %v797_v0, 0.0  ;;  %v622_v4 = vpop.f32.mrf.mxu2  ;;  %v782_v12 = vadd.f32 %v1785_v55, %v746_v7 }
 0x103   : > { %v711_v5 = vpop.f32.mrf.mxu3 }
 0x104   : > { %v1316_v6 = vpack.c.bf16 %v829_v3, %v828_v2  ;;  %v584_v8 = vpop.f32.mrf.mxu0  ;;  %v712_v10 = vadd.f32 %v711_v5, %v622_v4  ;;  %v814_v18 = vmax.f32 %v782_v12, 0.0 }
 0x105   : > { %v673_v9 = vpop.f32.mrf.mxu1 }
 0x106   : > { %1352 = vst [vmem:[%s1794_s28 + $0x50] sm:$0xff] %v1316_v6   ;;  %v674_v11 = vadd.f32 %v673_v9, %v584_v8  ;;  %v762_v14 = vmul.f32 %v1779_v51, %v712_v10 }
 0x108   : > { %v747_v13 = vmul.f32 %v1779_v51, %v674_v11  ;;  %v798_v23 = vadd.f32 %v1785_v55, %v762_v14 }
 0x10a   : > { %v783_v15 = vadd.f32 %v1785_v55, %v747_v13  ;;  %v624_v16 = vpop.f32.mrf.mxu2  ;;  %v830_v28 = vmax.f32 %v798_v23, 0.0 }
 0x10b   : > { %v713_v17 = vpop.f32.mrf.mxu3 }
 0x10c   : > { %v815_v19 = vmax.f32 %v783_v15, 0.0  ;;  %v714_v20 = vadd.f32 %v713_v17, %v624_v16  ;;  %v587_v21 = vpop.f32.mrf.mxu0 }
 0x10d   : > { %v676_v22 = vpop.f32.mrf.mxu1 }
 0x10e   : > { %v1281_v24 = vpack.c.bf16 %v815_v19, %v814_v18  ;;  %v763_v25 = vmul.f32 %v1779_v51, %v714_v20  ;;  %v677_v27 = vadd.f32 %v676_v22, %v587_v21 }
 0x110   : > { %1345 = vst [vmem:[%s1794_s28 + $0x18] sm:$0xff] %v1281_v24   ;;  %v799_v26 = vadd.f32 %v1785_v55, %v763_v25  ;;  %v748_v33 = vmul.f32 %v1779_v51, %v677_v27 }
 0x112   : > { %v831_v29 = vmax.f32 %v799_v26, 0.0  ;;  %v627_v30 = vpop.f32.mrf.mxu2  ;;  %v784_v38 = vadd.f32 %v1785_v55, %v748_v33 }
 0x113   : > { %v716_v31 = vpop.f32.mrf.mxu3 }
 0x114   : > { %v1321_v32 = vpack.c.bf16 %v831_v29, %v830_v28  ;;  %v589_v34 = vpop.f32.mrf.mxu0  ;;  %v717_v36 = vadd.f32 %v716_v31, %v627_v30  ;;  %v816_v44 = vmax.f32 %v784_v38, 0.0 }
 0x115   : > { %v678_v35 = vpop.f32.mrf.mxu1 }
 0x116   : > { %1353 = vst [vmem:[%s1794_s28 + $0x58] sm:$0xff] %v1321_v32   ;;  %v679_v37 = vadd.f32 %v678_v35, %v589_v34  ;;  %v764_v40 = vmul.f32 %v1779_v51, %v717_v36 }
 0x118   : > { %v749_v39 = vmul.f32 %v1779_v51, %v679_v37  ;;  %v800_v49 = vadd.f32 %v1785_v55, %v764_v40 }
 0x11a   : > { %v785_v41 = vadd.f32 %v1785_v55, %v749_v39  ;;  %v629_v42 = vpop.f32.mrf.mxu2  ;;  %v832_v56 = vmax.f32 %v800_v49, 0.0 }
 0x11b   : > { %v718_v43 = vpop.f32.mrf.mxu3 }
 0x11c   : > { %v817_v45 = vmax.f32 %v785_v41, 0.0  ;;  %v719_v46 = vadd.f32 %v718_v43, %v629_v42  ;;  %v592_v47 = vpop.f32.mrf.mxu0 }
 0x11d   : > { %v681_v48 = vpop.f32.mrf.mxu1 }
 0x11e   : > { %v1286_v50 = vpack.c.bf16 %v817_v45, %v816_v44  ;;  %v765_v52 = vmul.f32 %v1779_v51, %v719_v46  ;;  %v682_v54 = vadd.f32 %v681_v48, %v592_v47 }
 0x120   : > { %1346 = vst [vmem:[%s1794_s28 + $0x20] sm:$0xff] %v1286_v50   ;;  %v801_v53 = vadd.f32 %v1785_v55, %v765_v52  ;;  %v750_v61 = vmul.f32 %v1779_v51, %v682_v54 }
 0x122   : > { %v833_v57 = vmax.f32 %v801_v53, 0.0  ;;  %v632_v58 = vpop.f32.mrf.mxu2  ;;  %v786_v2 = vadd.f32 %v1785_v55, %v750_v61 }
 0x123   : > { %v721_v59 = vpop.f32.mrf.mxu3 }
 0x124   : > { %v1326_v60 = vpack.c.bf16 %v833_v57, %v832_v56  ;;  %v594_v62 = vpop.f32.mrf.mxu0  ;;  %v722_v0 = vadd.f32 %v721_v59, %v632_v58  ;;  %v818_v8 = vmax.f32 %v786_v2, 0.0 }
 0x125   : > { %v683_v63 = vpop.f32.mrf.mxu1 }
 0x126   : > { %1354 = vst [vmem:[%s1794_s28 + $0x60] sm:$0xff] %v1326_v60   ;;  %v684_v1 = vadd.f32 %v683_v63, %v594_v62  ;;  %v766_v4 = vmul.f32 %v1779_v51, %v722_v0 }
 0x128   : > { %v751_v3 = vmul.f32 %v1779_v51, %v684_v1  ;;  %v802_v13 = vadd.f32 %v1785_v55, %v766_v4 }
 0x12a   : > { %v787_v5 = vadd.f32 %v1785_v55, %v751_v3  ;;  %v634_v6 = vpop.f32.mrf.mxu2  ;;  %v834_v18 = vmax.f32 %v802_v13, 0.0 }
 0x12b   : > { %v723_v7 = vpop.f32.mrf.mxu3 }
 0x12c   : > { %v819_v9 = vmax.f32 %v787_v5, 0.0  ;;  %v724_v10 = vadd.f32 %v723_v7, %v634_v6  ;;  %v597_v11 = vpop.f32.mrf.mxu0 }
 0x12d   : > { %v686_v12 = vpop.f32.mrf.mxu1 }
 0x12e   : > { %v1291_v14 = vpack.c.bf16 %v819_v9, %v818_v8  ;;  %v767_v15 = vmul.f32 %v1779_v51, %v724_v10  ;;  %v687_v17 = vadd.f32 %v686_v12, %v597_v11 }
 0x130   : > { %1347 = vst [vmem:[%s1794_s28 + $0x28] sm:$0xff] %v1291_v14   ;;  %v803_v16 = vadd.f32 %v1785_v55, %v767_v15  ;;  %v752_v23 = vmul.f32 %v1779_v51, %v687_v17 }
 0x132   : > { %v835_v19 = vmax.f32 %v803_v16, 0.0  ;;  %v637_v20 = vpop.f32.mrf.mxu2  ;;  %v788_v28 = vadd.f32 %v1785_v55, %v752_v23 }
 0x133   : > { %v726_v21 = vpop.f32.mrf.mxu3 }
 0x134   : > { %v1331_v22 = vpack.c.bf16 %v835_v19, %v834_v18  ;;  %v599_v24 = vpop.f32.mrf.mxu0  ;;  %v727_v26 = vadd.f32 %v726_v21, %v637_v20  ;;  %v820_v34 = vmax.f32 %v788_v28, 0.0 }
 0x135   : > { %v688_v25 = vpop.f32.mrf.mxu1 }
 0x136   : > { %1355 = vst [vmem:[%s1794_s28 + $0x68] sm:$0xff] %v1331_v22   ;;  %v689_v27 = vadd.f32 %v688_v25, %v599_v24  ;;  %v768_v30 = vmul.f32 %v1779_v51, %v727_v26 }
 0x138   : > { %v753_v29 = vmul.f32 %v1779_v51, %v689_v27  ;;  %v804_v39 = vadd.f32 %v1785_v55, %v768_v30 }
 0x13a   : > { %v789_v31 = vadd.f32 %v1785_v55, %v753_v29  ;;  %v639_v32 = vpop.f32.mrf.mxu2  ;;  %v836_v44 = vmax.f32 %v804_v39, 0.0 }
 0x13b   : > { %v728_v33 = vpop.f32.mrf.mxu3 }
 0x13c   : > { %v821_v35 = vmax.f32 %v789_v31, 0.0  ;;  %v729_v36 = vadd.f32 %v728_v33, %v639_v32  ;;  %v602_v37 = vpop.f32.mrf.mxu0 }
 0x13d   : > { %v691_v38 = vpop.f32.mrf.mxu1 }
 0x13e   : > { %v1296_v40 = vpack.c.bf16 %v821_v35, %v820_v34  ;;  %v769_v41 = vmul.f32 %v1779_v51, %v729_v36  ;;  %v692_v43 = vadd.f32 %v691_v38, %v602_v37 }
 0x140   : > { %1348 = vst [vmem:[%s1794_s28 + $0x30] sm:$0xff] %v1296_v40   ;;  %v805_v42 = vadd.f32 %v1785_v55, %v769_v41  ;;  %v754_v49 = vmul.f32 %v1779_v51, %v692_v43 }
 0x142   : > { %v837_v45 = vmax.f32 %v805_v42, 0.0  ;;  %v642_v46 = vpop.f32.mrf.mxu2  ;;  %v790_v56 = vadd.f32 %v1785_v55, %v754_v49 }
 0x143   : > { %v731_v47 = vpop.f32.mrf.mxu3 }
 0x144   : > { %v1336_v48 = vpack.c.bf16 %v837_v45, %v836_v44  ;;  %v604_v50 = vpop.f32.mrf.mxu0  ;;  %v732_v53 = vadd.f32 %v731_v47, %v642_v46  ;;  %v822_v62 = vmax.f32 %v790_v56, 0.0 }
 0x145   : > { %v693_v52 = vpop.f32.mrf.mxu1 }
 0x146   : > { %1356 = vst [vmem:[%s1794_s28 + $0x70] sm:$0xff] %v1336_v48   ;;  %v694_v54 = vadd.f32 %v693_v52, %v604_v50  ;;  %v770_v58 = vmul.f32 %v1779_v51, %v732_v53 }
 0x148   : > { %v755_v57 = vmul.f32 %v1779_v51, %v694_v54  ;;  %v806_v1 = vadd.f32 %v1785_v55, %v770_v58 }
 0x14a   : > { %v791_v59 = vadd.f32 %v1785_v55, %v755_v57  ;;  %v644_v60 = vpop.f32.mrf.mxu2  ;;  %v838_v5 = vmax.f32 %v806_v1, 0.0 }
 0x14b   : > { %v733_v61 = vpop.f32.mrf.mxu3 }
 0x14c   : > { %v823_v63 = vmax.f32 %v791_v59, 0.0  ;;  %v734_v0 = vadd.f32 %v733_v61, %v644_v60 }
 0x14e   : > { %v1301_v2 = vpack.c.bf16 %v823_v63, %v822_v62  ;;  %v771_v3 = vmul.f32 %v1779_v51, %v734_v0 }
 0x150   : > { %1349 = vst [vmem:[%s1794_s28 + $0x38] sm:$0xff] %v1301_v2   ;;  %v807_v4 = vadd.f32 %v1785_v55, %v771_v3 }
 0x152   : > { %v839_v6 = vmax.f32 %v807_v4, 0.0 }
 0x154   : > { %v1341_v7 = vpack.c.bf16 %v839_v6, %v838_v5 }
 0x156   : > { %1357 = vst [vmem:[%s1794_s28 + $0x78] sm:$0xff] %v1341_v7  }
 0x157   : > { %1526 = shalt.err (!%p1523_p10)
}
 0x158   : > { %s1576_s20 = smov 64   ;;  %s1577_s25 = smov 4  }
 0x159   : > { %1380 = dma.vmem_to_hbm [thread:$0]  (%p1670_p7), %s918_s19, 2048, %s920_s13, %s905_s10, %s1576_s20, %s1576_s20, %s1577_s25  }
 0x15a PF: > { %s934_s27 = sand.u32 1, %s1557_s15   ;;  %p1913_p12 = scmp.ge.s32.totalorder %s1569_s18, 2 }
 0x15b   : > { %s935_s28 = scalar_lea.sflag [#allocation4], %s934_s27 }
 0x15c   : > { %p1391_p13 = pnand %p1913_p12, %p1638_p6 }
 0x15e   : > { %p1392_p0 = pneg %p1391_p13 }
 0x160   : > { %1552 = dma.done.wait (%p1392_p0), %s935_s28, 2048  }
 0x161   : > { %1554 = vsyncadd (%p1392_p0), %s935_s28, 4294965248  ;;  %p18_p3 = scmp.ge.s32.totalorder %s1656_s29, 4   ;;  %s1914_s15 = smov %s1561_s16 }
 0x162   : > { %s1915_s16 = smov %s1565_s17  ;;  %s1916_s17 = smov %s1666_s8 }
 0x163   : > { %s1917_s18 = smov %s1656_s29  ;;  %20 = sbr.rel (!%p18_p3) target bundleno = 6 (0x6), region = 85 }
 0x168   :  { %941 = vsyncpa [#allocation3], 1 }
 0x169   :  { %943 = vsyncpa [#allocation3 + $0x1], 1 }
 0x16a   :  { %944 = vsyncpa [#allocation6], 1 }
 0x16b   :  { %945 = vsyncpa [#allocation4], 1 }
 0x16c   :  { %947 = vsyncpa [#allocation4 + $0x1], 1 }

</bundles_post_ra>
